<compile_context>
chip_gen: v6e
topology: v6e:2x2x1
jax: 0.10.0
libtpu: 0.0.40
codegen_flags: <defaults>
</compile_context>

<pallas_src>
import functools

import jax
import jax.numpy as jnp
from jax.experimental import pallas as pl
from jax.experimental.pallas import tpu as pltpu

_LANES = 128
_SUBLANES = 8
_DEFAULT_TILE_ROWS_P1 = 8192          # 8192 x 128 x f32 = 4 MiB per pass-1 block
_DEFAULT_TILE_ROWS_P2 = 4096          # 4096 x 128 x f32 = 2 MiB per pass-2 block
_FUSED_LIMIT_BYTES = 8 * 1024 * 1024  # single-pass whole-tensor-in-VMEM path
_NUM_CORE_SPLIT = 2                   # pass-1 TC split for v7x; serial elsewhere


def _cdiv(a, b):
    return -(-a // b)


def _round_up(v, m):
    return ((v + m - 1) // m) * m


# ---------------------------------------------------------------------------
# Fused single-pass kernel: whole tensor resident in VMEM.
# ---------------------------------------------------------------------------
def _fused_quantize_kernel(x_ref, o_ref, *, levels):
    t = jnp.tanh(x_ref[...].astype(jnp.float32))
    m = jnp.maximum(jnp.max(jnp.abs(t)), 1e-12)   # clamp: all-zero insurance
    c1 = (0.5 * levels) / m
    c2 = 0.5 * levels
    o_ref[...] = (jnp.round(t * c1 + c2) * (2.0 / levels) - 1.0).astype(o_ref.dtype)


# ---------------------------------------------------------------------------
# Tiled pass 1: global max(|x|) with a per-core (8,128) VMEM accumulator.
# Grid = (num_split, blocks_per_core); outer axis is "parallel" (v7x 2 TCs).
# ---------------------------------------------------------------------------
def _absmax_kernel(x_ref, m_ref, acc_ref, *, total_rows, blocks_per_core,
                   n_full_blocks, needs_mask):
    c = pl.program_id(0)
    i = pl.program_id(1)

    @pl.when(i == 0)
    def _():
        acc_ref[...] = jnp.zeros_like(acc_ref)

    tr = x_ref.shape[0]

    def update(mask_tail):
        a = jnp.abs(x_ref[...].astype(jnp.float32))
        if mask_tail:
            # Rows past the end of the array (partial / fully-OOB blocks) hold
            # unspecified data; mask them out of the max.
            gb = c * blocks_per_core + i
            row_ids = jax.lax.broadcasted_iota(jnp.int32, a.shape, 0) + gb * tr
            a = jnp.where(row_ids < total_rows, a, 0.0)
        # Reduce along the leading (vreg-count) axis only -> pure VPU
        # elementwise maxes into the resident (8,128) accumulator.
        partial = jnp.max(a.reshape(tr // _SUBLANES, _SUBLANES, _LANES), axis=0)
        acc_ref[...] = jnp.maximum(acc_ref[...], partial)

    if needs_mask:
        gb = c * blocks_per_core + i
        # Only edge blocks pay the iota+compare+select; interior blocks do not.
        @pl.when(gb < n_full_blocks)
        def _():
            update(False)

        @pl.when(gb >= n_full_blocks)
        def _():
            update(True)
    else:
        update(False)

    @pl.when(i == pl.num_programs(1) - 1)
    def _():
        # Single cross-lane/sublane reduce + scalar SMEM store per core.
        m_ref[0, 0] = jnp.max(acc_ref[...])


# ---------------------------------------------------------------------------
# Tiled pass 2: elementwise quantization with precomputed constant c1 (SMEM).
# ---------------------------------------------------------------------------
def _quantize_kernel(c1_ref, x_ref, o_ref, *, levels):
    c1 = c1_ref[0, 0]
    c2 = 0.5 * levels
    t = jnp.tanh(x_ref[...].astype(jnp.float32))
    o_ref[...] = (jnp.round(t * c1 + c2) * (2.0 / levels) - 1.0).astype(o_ref.dtype)


def weight_quantizer(x, w_bits, *, fused_limit_bytes=_FUSED_LIMIT_BYTES,
                     tile_rows_pass1=_DEFAULT_TILE_ROWS_P1,
                     tile_rows_pass2=_DEFAULT_TILE_ROWS_P2):
    """JAX/Pallas equivalent of WeightQuantizer.forward (forward pass only)."""
    if w_bits == 32:
        return x
    if w_bits == 1:
        raise AssertionError("Binary quantization is not supported")

    levels = float(2 ** w_bits - 1)
    n = x.size
    orig_shape = x.shape

    # Lane-dense (rows, 128) slab.  Padding is |.|-neutral for the max
    # (|0| = 0) and padded outputs are sliced off afterwards.
    flat = x.reshape(-1)
    pad = (-n) % _LANES
    if pad:
        flat = jnp.pad(flat, (0, pad))
    rows = flat.shape[0] // _LANES
    x2d = flat.reshape(rows, _LANES)
    nbytes = x2d.size * x2d.dtype.itemsize

    # ---------------- fused single-pass path (common case) ----------------
    if nbytes <= fused_limit_bytes:
        vmem_limit = int(min(40 * 1024 * 1024, max(8 * 1024 * 1024, 5 * nbytes)))
        out2d = pl.pallas_call(
            functools.partial(_fused_quantize_kernel, levels=levels),
            out_shape=jax.ShapeDtypeStruct(x2d.shape, x.dtype),
            compiler_params=pltpu.CompilerParams(vmem_limit_bytes=vmem_limit),
        )(x2d)
        out_flat = out2d.reshape(-1)
        if pad:
            out_flat = out_flat[:n]
        return out_flat.reshape(orig_shape)

    # ---------------------- tiled two-pass path ---------------------------
    # --- pass 1: global max(|x|) ---
    tile1 = max(_SUBLANES, int(tile_rows_pass1) - int(tile_rows_pass1) % _SUBLANES)
    tile1 = min(tile1, _round_up(rows, _SUBLANES))
    n_blocks1 = _cdiv(rows, tile1)
    num_split = _NUM_CORE_SPLIT if n_blocks1 >= 2 else 1
    bpc = _cdiv(n_blocks1, num_split)
    n_full_blocks = rows // tile1
    needs_mask = (num_split * bpc * tile1) != rows

    if num_split * bpc > n_blocks1:
        # Some core-split blocks are fully out of range: clamp the block index
        # so the DMA stays in bounds; the in-kernel mask zeroes their rows.
        def x1_map(c, i):
            return (jnp.minimum(c * bpc + i, n_blocks1 - 1), 0)
    else:
        def x1_map(c, i):
            return (c * bpc + i, 0)

    partial_max = pl.pallas_call(
        functools.partial(_absmax_kernel, total_rows=rows, blocks_per_core=bpc,
                          n_full_blocks=n_full_blocks, needs_mask=needs_mask),
        out_shape=jax.ShapeDtypeStruct((num_split, 1), jnp.float32),
        grid=(num_split, bpc),
        in_specs=[pl.BlockSpec((tile1, _LANES), x1_map)],
        out_specs=pl.BlockSpec((1, 1), lambda c, i: (c, 0),
                               memory_space=pltpu.MemorySpace.SMEM),
        scratch_shapes=[pltpu.VMEM((_SUBLANES, _LANES), jnp.float32)],
        compiler_params=pltpu.CompilerParams(
            dimension_semantics=("parallel", "arbitrary"),
            vmem_limit_bytes=24 * 1024 * 1024),
    )(x2d)

    # Fold the quantization constant once in XLA on the tiny pass-1 result.
    # tanh(max|x|) == max|tanh(x)| exactly (tanh is odd & monotone).
    m_t = jnp.maximum(jnp.tanh(jnp.max(partial_max)), 1e-12)
    c1 = ((0.5 * levels) / m_t).reshape(1, 1).astype(jnp.float32)

    # --- pass 2: elementwise quantization ---
    tile2 = max(_SUBLANES, int(tile_rows_pass2) - int(tile_rows_pass2) % _SUBLANES)
    tile2 = min(tile2, _round_up(rows, _SUBLANES))
    n_blocks2 = _cdiv(rows, tile2)

    out2d = pl.pallas_call(
        functools.partial(_quantize_kernel, levels=levels),
        out_shape=jax.ShapeDtypeStruct((rows, _LANES), x.dtype),
        grid=(n_blocks2,),
        in_specs=[
            pl.BlockSpec((1, 1), lambda i: (0, 0),
                         memory_space=pltpu.MemorySpace.SMEM),
            pl.BlockSpec((tile2, _LANES), lambda i: (i, 0)),
        ],
        out_specs=pl.BlockSpec((tile2, _LANES), lambda i: (i, 0)),
        compiler_params=pltpu.CompilerParams(
            dimension_semantics=("parallel",),
            vmem_limit_bytes=32 * 1024 * 1024),
    )(c1, x2d)

    out_flat = out2d.reshape(-1)
    if pad:
        out_flat = out_flat[:n]
    return out_flat.reshape(orig_shape)


# ---------------------------------------------------------------------------
# Pure-JAX reference + tolerant checker (folded math may flip a value sitting
# exactly on a round() boundary by one quantization step).
# ---------------------------------------------------------------------------
def _reference(x, w_bits):
    if w_bits == 32:
        return x
    t = jnp.tanh(x.astype(jnp.float32))
    q = t / 2.0 / jnp.max(jnp.abs(t)) + 0.5
    scale = 1.0 / float(2 ** w_bits - 1)
    q = jnp.round(q / scale) * scale
    return (2.0 * q - 1.0).astype(x.dtype)


def _check(out, ref, w_bits, name):
    assert out.shape == ref.shape and out.dtype == ref.dtype, name
    step = 2.0 / float(2 ** w_bits - 1)
    diff = jnp.abs(out.astype(jnp.float32) - ref.astype(jnp.float32))
    max_diff = float(jnp.max(diff))
    n_big = int(jnp.sum(diff > 1e-5))
    assert max_diff <= step + 1e-5, f"{name}: max diff {max_diff}"
    assert n_big <= max(2, out.size // 100), f"{name}: {n_big} boundary mismatches"


if __name__ == "__main__":
    key = jax.random.PRNGKey(0)
    k0, k1 = jax.random.split(key)
    w_bits = 4

    # Conv-style OIHW weight: [O=2, I=4, kH=16, kW=16] (2048 elems -> fused path)
    w = jax.random.normal(k0, (2, 4, 16, 16), dtype=jnp.float32)
    out_fused = jax.block_until_ready(weight_quantizer(w, w_bits))
    _check(out_fused, _reference(w, w_bits), w_bits, "fused")

    # Force the tiled two-pass path with a multi-block grid on the same tensor.
    out_tiled = jax.block_until_ready(
        weight_quantizer(w, w_bits, fused_limit_bytes=0,
                         tile_rows_pass1=8, tile_rows_pass2=8))
    _check(out_tiled, _reference(w, w_bits), w_bits, "tiled")

    # Ragged element count (not a multiple of 128): lane-dense padded fused path
    # and tiled masked-tail path.
    w2 = jax.random.normal(k1, (3, 4, 5, 7), dtype=jnp.float32)
    out_r1 = jax.block_until_ready(weight_quantizer(w2, w_bits))
    _check(out_r1, _reference(w2, w_bits), w_bits, "fused-ragged")
    out_r2 = jax.block_until_ready(
        weight_quantizer(w2, w_bits, fused_limit_bytes=0,
                         tile_rows_pass1=8, tile_rows_pass2=8))
    _check(out_r2, _reference(w2, w_bits), w_bits, "tiled-ragged")

    # w_bits == 32 passthrough
    out32 = jax.block_until_ready(weight_quantizer(w, 32))
    assert jnp.array_equal(out32, w)

    print("KERNEL_OK")
</pallas_src>

<mosaic_0001>
module attributes {stable_mosaic.version = 11 : i64} {
  func.func @_fused_quantize_kernel(%arg0: memref<16x128xf32, #tpu.memory_space<vmem>>, %arg1: memref<16x128xf32, #tpu.memory_space<vmem>>) attributes {dimension_semantics = [], scalar_prefetch = 0 : i64, scratch_operands = 0 : i64, tpu.core_type = #tpu.core_type<tc>} {
    %c0 = arith.constant 0 : index
    %c0_0 = arith.constant 0 : index
    %0 = vector.load %arg0[%c0, %c0_0] : memref<16x128xf32, #tpu.memory_space<vmem>>, vector<16x128xf32>
    %1 = math.tanh %0 : vector<16x128xf32>
    %2 = math.absf %1 : vector<16x128xf32>
    %3 = vector.shape_cast %2 : vector<16x128xf32> to vector<1x16x128xf32>
    %cst = arith.constant dense<0xFF800000> : vector<1xf32>
    %4 = vector.multi_reduction <maximumf>, %3, %cst [1, 2] : vector<1x16x128xf32> to vector<1xf32>
    %5 = vector.shape_cast %4 : vector<1xf32> to vector<1x1x1xf32>
    %6 = vector.extract %5[0, 0, 0] : f32 from vector<1x1x1xf32>
    %cst_1 = arith.constant 9.99999996E-13 : f32
    %7 = arith.maximumf %6, %cst_1 : f32
    %cst_2 = arith.constant 7.500000e+00 : f32
    %8 = arith.divf %cst_2, %7 : f32
    %9 = vector.broadcast %8 : f32 to vector<16x128xf32>
    %10 = arith.mulf %1, %9 : vector<16x128xf32>
    %cst_3 = arith.constant 7.500000e+00 : f32
    %11 = vector.broadcast %cst_3 : f32 to vector<16x128xf32>
    %12 = arith.addf %10, %11 : vector<16x128xf32>
    %13 = math.roundeven %12 : vector<16x128xf32>
    %cst_4 = arith.constant 0.13333334 : f32
    %14 = vector.broadcast %cst_4 : f32 to vector<16x128xf32>
    %15 = arith.mulf %13, %14 : vector<16x128xf32>
    %cst_5 = arith.constant 1.000000e+00 : f32
    %16 = vector.broadcast %cst_5 : f32 to vector<16x128xf32>
    %17 = arith.subf %15, %16 : vector<16x128xf32>
    %c0_6 = arith.constant 0 : index
    %c0_7 = arith.constant 0 : index
    %18 = vector.load %arg1[%c0_6, %c0_7] : memref<16x128xf32, #tpu.memory_space<vmem>>, vector<16x128xf32>
    tpu.vector_store %arg1[%c0_6, %c0_7], %17 {strides = array<i32>} : memref<16x128xf32, #tpu.memory_space<vmem>>, vector<16x128xf32>,
    return
  }
}

</mosaic_0001>

<bundles_post_ra>
// kernel: tpu_custom_call.1
= control target key start
LH: loop header
LB: loop body
LE: loop exit
PB: predicated region body
PF: predicated region fallthrough
CT: control target
= control target key end

     0   :  { %6 = vsyncpa [#allocation3], 0  ;;  %s178_s0 = inlined_call_operand.hbm [shape: f32[16,128], index: 0, kind: input, shape index: {}]   ;;  %s179_s1 = inlined_call_operand.hbm [shape: f32[16,128], index: 1, kind: output, shape index: {}]  }
   0x1   :  { %7 = vsyncpa [#allocation4], 0  ;;  %s151_s6 = smov [#allocation2]  }
   0x2   :  { %s13_s7 = sshll.u32 %s151_s6, 4  ;;  %s14_s7 = int_to_ptr.vmem [resolvable:$true] %s13_s7 }
   0x3   :  { %s115_s8 = scalar_lea.vmem %s14_s7, 256  ;;  %p120_p1 = scmp.lt.s32.totalorder %s14_s7, %s14_s7 }
   0x4   :  { %p116_p0 = scmp.ne.s32.totalorder %s14_s7, %s115_s8  ;;  %p121_p2 = scmp.lt.s32.totalorder %s115_s8, %s115_s8 }
   0x6   :  { %p122_p3 = por %p121_p2, %p120_p1 }
   0x8   :  { %p123_p4 = pnand %p122_p3, %p116_p0 }
   0xa   :  { %126 = shalt.err (!%p123_p4)
}
   0xb   :  { %s152_s9 = smov 128   ;;  %s153_s10 = smov 8  }
   0xc   :  { %19 = dma.hbm_to_vmem [thread:$0]  %s178_s0, 256, %s14_s7, [#allocation3], %s152_s9, %s152_s9, %s153_s10  }
   0xd   :  { %147 = dma.done.wait [#allocation3], 256  }
   0xe   :  { %148 = vsyncadd [#allocation3], 4294967040  ;;  %v23_v0 = vld [vmem:[#allocation2] sm:$0xff]  ;;  %v24_v1 = vld [vmem:[#allocation2 + $0x8] sm:$0xff]  ;;  %s154_s13 = smov 1e-12  }
   0xf   :  { %101 = vtanh.f32 %v23_v0  ;;  %s155_s17 = smov [#allocation5]  }
  0x10   :  { %103 = vtanh.f32 %v24_v1  ;;  %s62_s18 = sshll.u32 %s155_s17, 4  ;;  %s63_s18 = int_to_ptr.vmem [resolvable:$true] %s62_s18 }
  0x11   :  { %s127_s19 = scalar_lea.vmem %s63_s18, 256  ;;  %p132_p6 = scmp.lt.s32.totalorder %s63_s18, %s63_s18 }
  0x12   :  { %p128_p5 = scmp.ne.s32.totalorder %s63_s18, %s127_s19  ;;  %p133_p7 = scmp.lt.s32.totalorder %s127_s19, %s127_s19 }
  0x14   :  { %p134_p8 = por %p133_p7, %p132_p6 }
  0x16   :  { %p135_p9 = pnand %p134_p8, %p128_p5 }
  0x1c   :  { %v102_v2 = vpop.eup %101 }
  0x1d   :  { %v104_v3 = vpop.eup %103  ;;  %v27_v4 = vand.u32 2147483647, %v102_v2 }
  0x1e   :  { %v28_v5 = vand.u32 2147483647, %v104_v3 }
  0x20   :  { %v29_v6 = vmax.f32.f32 %v27_v4, %v28_v5 }
  0x22   :  { %30 = vmax.xlane.f32.xlu0 %v29_v6 }
  0xab   :  { %v31_v7 = vpop.xlane.xlu0 %30 }
  0xac   :  { %v32_v8 = vrot.slane %v31_v7, 4 }
  0xae   :  { %v33_v9 = vmax.f32 %v31_v7, %v32_v8 }
  0xb0   :  { %v34_v10 = vrot.slane %v33_v9, 2 }
  0xb2   :  { %v35_v11 = vmax.f32 %v33_v9, %v34_v10 }
  0xb4   :  { %v36_v12 = vrot.slane %v35_v11, 1 }
  0xb6   :  { %v37_v13 = vmax.f32 %v35_v11, %v36_v12 }
  0xb8   :  { %76 = vpush %v37_v13 }
  0xe9   :  { %s77_s0 = spop %76 }
  0xea   :  { %s39_s14 = smax.f32 %s154_s13, %s77_s0 }
  0xeb   :  { %v40_v14 = vstv %s39_s14 }
  0xec   :  { %105 = vrcp.f32 %v40_v14 }
  0xf9   :  { %v106_v15 = vpop.eup %105 }
  0xfa   :  { %78 = vpush %v106_v15 }
 0x12b   :  { %s79_s15 = spop %78 }
 0x12c   :  { %s43_s16 = smul.f32 7.5, %s79_s15 }
 0x12e   :  { %v44_v16 = vstv %s43_s16 }
 0x12f   :  { %v45_v17 = vmul.f32 %v102_v2, %v44_v16  ;;  %v46_v18 = vmul.f32 %v104_v3, %v44_v16 }
 0x131   :  { %v47_v19 = vadd.f32 7.5, %v45_v17  ;;  %v48_v20 = vadd.f32 7.5, %v46_v18 }
 0x133   :  { %v82_v21 = vcvt.f32.s32 %v47_v19  ;;  %v90_v22 = vcvt.f32.s32 %v48_v20  ;;  %v80_v25 = vand.u32 2147483647, %v47_v19  ;;  %v88_v26 = vand.u32 2147483647, %v48_v20 }
 0x134   :  { %v85_v28 = vand.u32 2147483648, %v47_v19  ;;  %v93_v30 = vand.u32 2147483648, %v48_v20 }
 0x135   :  { %v83_v23 = vcvt.s32.f32 %v82_v21  ;;  %v91_v24 = vcvt.s32.f32 %v90_v22  ;;  %vm81_vm0 = vcmp.lt.f32.partialorder %v80_v25, 8388608.0  ;;  %vm89_vm1 = vcmp.lt.f32.partialorder %v88_v26, 8388608.0 }
 0x137   :  { %v84_v27 = vand.u32 2147483647, %v83_v23  ;;  %v92_v29 = vand.u32 2147483647, %v91_v24 }
 0x139   :  { %v86_v31 = vor.u32 %v85_v28, %v84_v27  ;;  %v94_v32 = vor.u32 %v93_v30, %v92_v29 }
 0x13b   :  { %v87_v33 = vsel %vm81_vm0, %v86_v31, %v47_v19  ;;  %v95_v34 = vsel %vm89_vm1, %v94_v32, %v48_v20 }
 0x13c   :  { %v51_v35 = vmul.f32 0.13333334, %v87_v33  ;;  %v52_v36 = vmul.f32 0.13333334, %v95_v34 }
 0x13e   :  { %v74_v37 = vadd.f32 -1.0, %v51_v35  ;;  %v75_v38 = vadd.f32 -1.0, %v52_v36 }
 0x140   :  { %55 = vst [vmem:[#allocation5] sm:$0xff] %v74_v37  ;;  %56 = vst [vmem:[#allocation5 + $0x8] sm:$0xff] %v75_v38 }
 0x141   :  { %138 = shalt.err (!%p135_p9)
}
 0x142   :  { %68 = dma.vmem_to_hbm [thread:$0]  %s63_s18, 256, %s179_s1, [#allocation4], %s152_s9, %s152_s9, %s153_s10  }
 0x143   :  { %149 = dma.done.wait [#allocation4], 256  }
 0x144   :  { %150 = vsyncadd [#allocation4], 4294967040 }
 0x145   :  { %72 = vsyncpa [#allocation3], 1 }
 0x146   :  { %73 = vsyncpa [#allocation4], 1 }

</bundles_post_ra>
